<compile_context>
chip_gen: v7x
topology: tpu7x:2x2x1
jax: 0.10.0
libtpu: 0.0.40
codegen_flags: <defaults>
</compile_context>

<pallas_src>
import functools

import jax
import jax.numpy as jnp
from jax.experimental import pallas as pl
from jax.experimental.pallas import tpu as pltpu


GAMMA = 2.0          # hard-coded as an explicit square in the kernel
ALPHA_AT = 1.0       # alpha is a python float -> .gather raises -> at = 1.0

_MAX_TILE_C = 2048            # class-block width for vocab-scale C (lane aligned)
_TARGET_BLOCK_BYTES = 2 << 20  # ~2 MiB of input per pipeline buffer (fits all gens)
_NUM_ROW_CHUNKS = 2           # leading 'parallel' axis; v7x has 2 TCs, no-op on 1-TC chips


def _focal_loss_kernel(x_ref, t_ref, out_ref, m_ref, l_ref, xt_ref, *,
                       n_total, n_classes, tile_n, tile_c,
                       blocks_per_chunk, mask_rows, mask_cols):
    # x_ref:   (tile_n, tile_c) native dtype
    # t_ref:   (tile_n, 1)      int32
    # out_ref: (1, 1, 1)        f32 per-row-chunk partial sum (resident over i, ci)
    # m/l/xt:  (tile_n, 1)      f32 online-LSE row state (resident over ci)
    o = pl.program_id(0)
    i = pl.program_id(1)
    ci = pl.program_id(2)
    n_ci = pl.num_programs(2)

    @pl.when(jnp.logical_and(i == 0, ci == 0))
    def _init_out():
        out_ref[...] = jnp.zeros_like(out_ref)

    @pl.when(ci == 0)
    def _init_row_state():
        m_ref[...] = jnp.full(m_ref.shape, -jnp.inf, dtype=m_ref.dtype)
        l_ref[...] = jnp.zeros_like(l_ref)
        xt_ref[...] = jnp.zeros_like(xt_ref)

    x = x_ref[...]                              # (tile_n, tile_c), native dtype
    t = t_ref[...]                              # (tile_n, 1), int32
    cdt = x.dtype

    col_ids = ci * tile_c + jax.lax.broadcasted_iota(jnp.int32, x.shape, 1)
    if mask_cols:
        # Padded class columns of the last class block must not contribute.
        x = jnp.where(col_ids < n_classes, x, jnp.asarray(-jnp.inf, dtype=cdt))

    # Online (flash-style) log-sum-exp over the class axis; f32 row state.
    m_old = m_ref[...]
    m_new = jnp.maximum(m_old,
                        jnp.max(x, axis=1, keepdims=True).astype(jnp.float32))
    e = jnp.exp(x - m_new.astype(cdt))          # elementwise in native dtype
    blk_sum = jnp.sum(e.astype(jnp.float32), axis=1, keepdims=True)
    l_ref[...] = l_ref[...] * jnp.exp(m_old - m_new) + blk_sum
    m_ref[...] = m_new

    # Gather the raw target-class logit (at most one hit per row -> exact sum).
    hit = col_ids == t
    xt_ref[...] += jnp.sum(jnp.where(hit, x, jnp.zeros_like(x)),
                           axis=1, keepdims=True).astype(jnp.float32)

    @pl.when(ci == n_ci - 1)
    def _finalize():
        lse = m_ref[...] + jnp.log(l_ref[...])          # (tile_n, 1)
        logpt = xt_ref[...] - lse
        pt = jnp.exp(logpt)
        omp = 1.0 - pt                                   # gamma == 2.0 -> square
        loss = (-ALPHA_AT) * omp * omp * logpt           # (tile_n, 1) f32
        if mask_rows:
            rows = jax.lax.broadcasted_iota(jnp.int32, loss.shape, 0)
            global_row = (o * blocks_per_chunk + i) * tile_n + rows
            loss = jnp.where(global_row < n_total, loss, 0.0)
        out_ref[...] = out_ref[...] + jnp.sum(loss)      # scalar broadcast add


def focal_loss(inputs, targets, *, tile_n=None, tile_c=None,
               target_block_bytes=_TARGET_BLOCK_BYTES):
    """inputs: (N, C) float, targets: (N,) int in [0, C) -> scalar f32 mean loss."""
    n, c = inputs.shape
    dtype = inputs.dtype
    itemsize = jnp.dtype(dtype).itemsize
    sublane = {4: 8, 2: 16, 1: 32}.get(itemsize, 8)

    # ---- class-axis tiling (online LSE across class blocks when C is large) ----
    if tile_c is None:
        tile_c = c if c <= _MAX_TILE_C else _MAX_TILE_C
    if tile_c < c:
        tile_c = max(128, (tile_c // 128) * 128)          # partial class blocks: lane aligned
        tile_c = min(tile_c, max(128, (c // 128) * 128))
    if tile_c >= c:
        tile_c = c                                        # single full-width class block
    grid_c = pl.cdiv(c, tile_c)
    mask_cols = (c % tile_c) != 0

    # ---- row tiling: ~target_block_bytes of input per pipeline buffer ----
    if tile_n is None:
        tile_n = target_block_bytes // max(1, tile_c * itemsize)
        tile_n = int(min(max(tile_n, 256), 8192))
    if tile_n >= n:
        tile_n = n                                        # full-dim block: any N is legal
    else:
        tile_n = max(sublane, (tile_n // sublane) * sublane)
    grid_n = pl.cdiv(n, tile_n)

    # ---- leading 'parallel' row-chunk axis (2 TensorCores on v7x) ----
    num_chunks = _NUM_ROW_CHUNKS if grid_n >= _NUM_ROW_CHUNKS else 1
    blocks_per_chunk = pl.cdiv(grid_n, num_chunks)
    last_block = grid_n - 1
    mask_rows = (num_chunks * blocks_per_chunk * tile_n) != n

    t2d = targets.astype(jnp.int32).reshape(n, 1)

    def x_map(o, i, ci):
        # Clamp so the (at most num_chunks-1) padding steps re-read a valid
        # block; their rows are discarded by the global_row < N mask.
        return (jnp.minimum(o * blocks_per_chunk + i, last_block), ci)

    def t_map(o, i, ci):
        return (jnp.minimum(o * blocks_per_chunk + i, last_block), 0)

    def out_map(o, i, ci):
        return (o, 0, 0)

    # VMEM budget: double-buffered inputs + f32 intermediates + row state + slack.
    est_vmem = (2 * tile_n * tile_c * itemsize
                + 2 * tile_n * 4
                + 6 * tile_n * tile_c * 4
                + 4 * tile_n * 4
                + (2 << 20))
    vmem_limit = int(min(max(est_vmem, 32 << 20), 64 << 20))

    cost = pl.CostEstimate(
        flops=7 * n * c + 8 * n,
        transcendentals=n * c + 4 * n,
        bytes_accessed=n * c * itemsize + n * 4 + num_chunks * 4,
    )

    kernel = functools.partial(
        _focal_loss_kernel,
        n_total=n, n_classes=c, tile_n=tile_n, tile_c=tile_c,
        blocks_per_chunk=blocks_per_chunk,
        mask_rows=mask_rows, mask_cols=mask_cols)

    partial_sums = pl.pallas_call(
        kernel,
        out_shape=jax.ShapeDtypeStruct((num_chunks, 1, 1), jnp.float32),
        grid_spec=pltpu.PrefetchScalarGridSpec(
            num_scalar_prefetch=0,
            grid=(num_chunks, blocks_per_chunk, grid_c),
            in_specs=[
                pl.BlockSpec((tile_n, tile_c), x_map),
                pl.BlockSpec((tile_n, 1), t_map),
            ],
            out_specs=pl.BlockSpec((1, 1, 1), out_map),
            scratch_shapes=[
                pltpu.VMEM((tile_n, 1), jnp.float32),   # running max m
                pltpu.VMEM((tile_n, 1), jnp.float32),   # running sum-of-exp l
                pltpu.VMEM((tile_n, 1), jnp.float32),   # gathered target logit x_t
            ],
        ),
        compiler_params=pltpu.CompilerParams(
            dimension_semantics=("parallel", "arbitrary", "arbitrary"),
            vmem_limit_bytes=vmem_limit,
        ),
        cost_estimate=cost,
    )(inputs, t2d)

    return jnp.sum(partial_sums) / jnp.float32(n)


def _reference(inputs, targets):
    x = inputs.astype(jnp.float32)
    logpt_full = jax.nn.log_softmax(x, axis=1)
    logpt = jnp.take_along_axis(
        logpt_full, targets.astype(jnp.int32)[:, None], axis=1)[:, 0]
    pt = jnp.exp(logpt)
    loss = -ALPHA_AT * (1.0 - pt) ** GAMMA * logpt
    return loss.mean()


if __name__ == "__main__":
    key = jax.random.PRNGKey(0)
    k1, k2, k3, k4, k5, k6, k7, k8 = jax.random.split(key, 8)

    # Test 1: small shapes, single block, single chunk.
    N1, C1 = 8, 16
    x1 = jax.random.normal(k1, (N1, C1), dtype=jnp.float32)
    t1 = jax.random.randint(k2, (N1,), 0, C1, dtype=jnp.int32)
    out1 = focal_loss(x1, t1)
    jax.block_until_ready(out1)
    ref1 = _reference(x1, t1)
    assert jnp.allclose(out1, ref1, atol=1e-5, rtol=1e-5), (out1, ref1)

    # Test 2: multi-tile rows with a partial tail tile + 2 'parallel' row chunks
    # (exercises accumulator init, clamped padding block, row-tail masking).
    N2, C2 = 20, 16
    x2 = jax.random.normal(k3, (N2, C2), dtype=jnp.float32)
    t2 = jax.random.randint(k4, (N2,), 0, C2, dtype=jnp.int32)
    out2 = focal_loss(x2, t2, tile_n=8)
    jax.block_until_ready(out2)
    ref2 = _reference(x2, t2)
    assert jnp.allclose(out2, ref2, atol=1e-5, rtol=1e-5), (out2, ref2)

    # Test 3: class-axis tiling with online log-sum-exp and a partial class
    # block (column masking), plus 2 row chunks.
    N3, C3 = 16, 160
    x3 = jax.random.normal(k5, (N3, C3), dtype=jnp.float32)
    t3 = jax.random.randint(k6, (N3,), 0, C3, dtype=jnp.int32)
    out3 = focal_loss(x3, t3, tile_n=8, tile_c=128)
    jax.block_until_ready(out3)
    ref3 = _reference(x3, t3)
    assert jnp.allclose(out3, ref3, atol=1e-5, rtol=1e-5), (out3, ref3)

    # Test 4: bf16 input path (elementwise in bf16, f32 reductions), looser tol.
    N4, C4 = 16, 32
    x4 = jax.random.normal(k7, (N4, C4), dtype=jnp.float32).astype(jnp.bfloat16)
    t4 = jax.random.randint(k8, (N4,), 0, C4, dtype=jnp.int32)
    out4 = focal_loss(x4, t4)
    jax.block_until_ready(out4)
    ref4 = _reference(x4, t4)
    assert jnp.allclose(out4, ref4, atol=5e-3, rtol=5e-2), (out4, ref4)

    print("KERNEL_OK")
</pallas_src>

<mosaic_0001>
module attributes {stable_mosaic.version = 11 : i64} {
  func.func @_focal_loss_kernel(%arg0: i32, %arg1: i32, %arg2: i32, %arg3: memref<8x16xf32, #tpu.memory_space<vmem>>, %arg4: memref<8x1xi32, #tpu.memory_space<vmem>>, %arg5: memref<1x1x1xf32, #tpu.memory_space<vmem>>, %arg6: memref<8x1xf32, #tpu.memory_space<vmem>>, %arg7: memref<8x1xf32, #tpu.memory_space<vmem>>, %arg8: memref<8x1xf32, #tpu.memory_space<vmem>>) attributes {dimension_semantics = [#tpu.dimension_semantics<parallel>, #tpu.dimension_semantics<arbitrary>, #tpu.dimension_semantics<arbitrary>], iteration_bounds = array<i64: 1, 1, 1>, scalar_prefetch = 0 : i64, scratch_operands = 3 : i64, tpu.core_type = #tpu.core_type<tc>, window_params = [{transform_indices = @transform_0, window_bounds = array<i64: 8, 16>}, {transform_indices = @transform_1, window_bounds = array<i64: 8, 1>}, {transform_indices = @transform_2, window_bounds = array<i64: 1, 1, 1>}]} {
    %c0_i32 = arith.constant 0 : i32
    %0 = arith.cmpi eq, %arg1, %c0_i32 : i32
    %c0_i32_0 = arith.constant 0 : i32
    %1 = arith.cmpi eq, %arg2, %c0_i32_0 : i32
    %2 = arith.andi %0, %1 : i1
    %3 = arith.extui %2 : i1 to i32
    %c0_i32_1 = arith.constant 0 : i32
    %4 = arith.cmpi ne, %3, %c0_i32_1 : i32
    scf.if %4 {
      %cst_24 = arith.constant 0.000000e+00 : f32
      %42 = vector.broadcast %cst_24 : f32 to vector<1x1x1xf32>
      %c0_25 = arith.constant 0 : index
      %c0_26 = arith.constant 0 : index
      %c0_27 = arith.constant 0 : index
      %43 = vector.load %arg5[%c0_25, %c0_26, %c0_27] : memref<1x1x1xf32, #tpu.memory_space<vmem>>, vector<1x1x1xf32>
      tpu.vector_store %arg5[%c0_25, %c0_26, %c0_27], %42 {strides = array<i32>} : memref<1x1x1xf32, #tpu.memory_space<vmem>>, vector<1x1x1xf32>,
    } else {
    }
    %c0_i32_2 = arith.constant 0 : i32
    %5 = arith.cmpi eq, %arg2, %c0_i32_2 : i32
    %6 = arith.extui %5 : i1 to i32
    %c0_i32_3 = arith.constant 0 : i32
    %7 = arith.cmpi ne, %6, %c0_i32_3 : i32
    scf.if %7 {
      %cst_24 = arith.constant 0xFF800000 : f32
      %42 = vector.broadcast %cst_24 : f32 to vector<8x1xf32>
      %c0_25 = arith.constant 0 : index
      %c0_26 = arith.constant 0 : index
      %43 = vector.load %arg6[%c0_25, %c0_26] : memref<8x1xf32, #tpu.memory_space<vmem>>, vector<8x1xf32>
      tpu.vector_store %arg6[%c0_25, %c0_26], %42 {strides = array<i32>} : memref<8x1xf32, #tpu.memory_space<vmem>>, vector<8x1xf32>,
      %cst_27 = arith.constant 0.000000e+00 : f32
      %44 = vector.broadcast %cst_27 : f32 to vector<8x1xf32>
      %c0_28 = arith.constant 0 : index
      %c0_29 = arith.constant 0 : index
      %45 = vector.load %arg7[%c0_28, %c0_29] : memref<8x1xf32, #tpu.memory_space<vmem>>, vector<8x1xf32>
      tpu.vector_store %arg7[%c0_28, %c0_29], %44 {strides = array<i32>} : memref<8x1xf32, #tpu.memory_space<vmem>>, vector<8x1xf32>,
      %cst_30 = arith.constant 0.000000e+00 : f32
      %46 = vector.broadcast %cst_30 : f32 to vector<8x1xf32>
      %c0_31 = arith.constant 0 : index
      %c0_32 = arith.constant 0 : index
      %47 = vector.load %arg8[%c0_31, %c0_32] : memref<8x1xf32, #tpu.memory_space<vmem>>, vector<8x1xf32>
      tpu.vector_store %arg8[%c0_31, %c0_32], %46 {strides = array<i32>} : memref<8x1xf32, #tpu.memory_space<vmem>>, vector<8x1xf32>,
    } else {
    }
    %c0 = arith.constant 0 : index
    %c0_4 = arith.constant 0 : index
    %8 = vector.load %arg3[%c0, %c0_4] : memref<8x16xf32, #tpu.memory_space<vmem>>, vector<8x16xf32>
    %c0_5 = arith.constant 0 : index
    %c0_6 = arith.constant 0 : index
    %9 = vector.load %arg4[%c0_5, %c0_6] : memref<8x1xi32, #tpu.memory_space<vmem>>, vector<8x1xi32>
    %c16_i32 = arith.constant 16 : i32
    %10 = arith.muli %arg2, %c16_i32 : i32
    %11 = tpu.iota {dimensions = array<i32: 1>} : vector<8x16xi32>
    %12 = vector.broadcast %10 : i32 to vector<8x16xi32>
    %13 = arith.addi %12, %11 : vector<8x16xi32>
    %c0_7 = arith.constant 0 : index
    %c0_8 = arith.constant 0 : index
    %14 = vector.load %arg6[%c0_7, %c0_8] : memref<8x1xf32, #tpu.memory_space<vmem>>, vector<8x1xf32>
    %cst = arith.constant dense<0xFF800000> : vector<8xf32>
    %15 = vector.multi_reduction <maximumf>, %8, %cst [1] : vector<8x16xf32> to vector<8xf32>
    %16 = vector.shape_cast %15 : vector<8xf32> to vector<8x1xf32>
    %17 = arith.maximumf %14, %16 : vector<8x1xf32>
    %18 = vector.broadcast %17 : vector<8x1xf32> to vector<8x16xf32>
    %19 = arith.subf %8, %18 : vector<8x16xf32>
    %20 = math.exp %19 : vector<8x16xf32>
    %cst_9 = arith.constant dense<0.000000e+00> : vector<8xf32>
    %21 = vector.multi_reduction <add>, %20, %cst_9 [1] : vector<8x16xf32> to vector<8xf32>
    %22 = vector.shape_cast %21 : vector<8xf32> to vector<8x1xf32>
    %c0_10 = arith.constant 0 : index
    %c0_11 = arith.constant 0 : index
    %23 = vector.load %arg7[%c0_10, %c0_11] : memref<8x1xf32, #tpu.memory_space<vmem>>, vector<8x1xf32>
    %24 = arith.subf %14, %17 : vector<8x1xf32>
    %25 = math.exp %24 : vector<8x1xf32>
    %26 = arith.mulf %23, %25 : vector<8x1xf32>
    %27 = arith.addf %26, %22 : vector<8x1xf32>
    %c0_12 = arith.constant 0 : index
    %c0_13 = arith.constant 0 : index
    %28 = vector.load %arg7[%c0_12, %c0_13] : memref<8x1xf32, #tpu.memory_space<vmem>>, vector<8x1xf32>
    tpu.vector_store %arg7[%c0_12, %c0_13], %27 {strides = array<i32>} : memref<8x1xf32, #tpu.memory_space<vmem>>, vector<8x1xf32>,
    %c0_14 = arith.constant 0 : index
    %c0_15 = arith.constant 0 : index
    %29 = vector.load %arg6[%c0_14, %c0_15] : memref<8x1xf32, #tpu.memory_space<vmem>>, vector<8x1xf32>
    tpu.vector_store %arg6[%c0_14, %c0_15], %17 {strides = array<i32>} : memref<8x1xf32, #tpu.memory_space<vmem>>, vector<8x1xf32>,
    %30 = vector.broadcast %9 : vector<8x1xi32> to vector<8x16xi32>
    %31 = arith.cmpi eq, %13, %30 : vector<8x16xi32>
    %c0_16 = arith.constant 0 : index
    %c0_17 = arith.constant 0 : index
    %32 = vector.load %arg8[%c0_16, %c0_17] : memref<8x1xf32, #tpu.memory_space<vmem>>, vector<8x1xf32>
    %cst_18 = arith.constant 0.000000e+00 : f32
    %33 = vector.broadcast %cst_18 : f32 to vector<8x16xf32>
    %34 = arith.select %31, %8, %33 : vector<8x16xi1>, vector<8x16xf32>
    %cst_19 = arith.constant dense<0.000000e+00> : vector<8xf32>
    %35 = vector.multi_reduction <add>, %34, %cst_19 [1] : vector<8x16xf32> to vector<8xf32>
    %36 = vector.shape_cast %35 : vector<8xf32> to vector<8x1xf32>
    %37 = arith.addf %32, %36 : vector<8x1xf32>
    %c0_20 = arith.constant 0 : index
    %c0_21 = arith.constant 0 : index
    %38 = vector.load %arg8[%c0_20, %c0_21] : memref<8x1xf32, #tpu.memory_space<vmem>>, vector<8x1xf32>
    tpu.vector_store %arg8[%c0_20, %c0_21], %37 {strides = array<i32>} : memref<8x1xf32, #tpu.memory_space<vmem>>, vector<8x1xf32>,
    %c0_i32_22 = arith.constant 0 : i32
    %39 = arith.cmpi eq, %arg2, %c0_i32_22 : i32
    %40 = arith.extui %39 : i1 to i32
    %c0_i32_23 = arith.constant 0 : i32
    %41 = arith.cmpi ne, %40, %c0_i32_23 : i32
    scf.if %41 {
      %c0_24 = arith.constant 0 : index
      %c0_25 = arith.constant 0 : index
      %42 = vector.load %arg6[%c0_24, %c0_25] : memref<8x1xf32, #tpu.memory_space<vmem>>, vector<8x1xf32>
      %c0_26 = arith.constant 0 : index
      %c0_27 = arith.constant 0 : index
      %43 = vector.load %arg7[%c0_26, %c0_27] : memref<8x1xf32, #tpu.memory_space<vmem>>, vector<8x1xf32>
      %44 = math.log %43 : vector<8x1xf32>
      %45 = arith.addf %42, %44 : vector<8x1xf32>
      %c0_28 = arith.constant 0 : index
      %c0_29 = arith.constant 0 : index
      %46 = vector.load %arg8[%c0_28, %c0_29] : memref<8x1xf32, #tpu.memory_space<vmem>>, vector<8x1xf32>
      %47 = arith.subf %46, %45 : vector<8x1xf32>
      %48 = math.exp %47 : vector<8x1xf32>
      %cst_30 = arith.constant 1.000000e+00 : f32
      %49 = vector.broadcast %cst_30 : f32 to vector<8x1xf32>
      %50 = arith.subf %49, %48 : vector<8x1xf32>
      %cst_31 = arith.constant -1.000000e+00 : f32
      %51 = vector.broadcast %cst_31 : f32 to vector<8x1xf32>
      %52 = arith.mulf %51, %50 : vector<8x1xf32>
      %53 = arith.mulf %52, %50 : vector<8x1xf32>
      %54 = arith.mulf %53, %47 : vector<8x1xf32>
      %c0_32 = arith.constant 0 : index
      %c0_33 = arith.constant 0 : index
      %c0_34 = arith.constant 0 : index
      %55 = vector.load %arg5[%c0_32, %c0_33, %c0_34] : memref<1x1x1xf32, #tpu.memory_space<vmem>>, vector<1x1x1xf32>
      %56 = vector.shape_cast %54 : vector<8x1xf32> to vector<1x8x1xf32>
      %cst_35 = arith.constant dense<0.000000e+00> : vector<1xf32>
      %57 = vector.multi_reduction <add>, %56, %cst_35 [1, 2] : vector<1x8x1xf32> to vector<1xf32>
      %58 = vector.shape_cast %57 : vector<1xf32> to vector<1x1x1xf32>
      %59 = vector.extract %58[0, 0, 0] : f32 from vector<1x1x1xf32>
      %60 = vector.broadcast %59 : f32 to vector<1x1x1xf32>
      %61 = arith.addf %55, %60 : vector<1x1x1xf32>
      %c0_36 = arith.constant 0 : index
      %c0_37 = arith.constant 0 : index
      %c0_38 = arith.constant 0 : index
      %62 = vector.load %arg5[%c0_36, %c0_37, %c0_38] : memref<1x1x1xf32, #tpu.memory_space<vmem>>, vector<1x1x1xf32>
      tpu.vector_store %arg5[%c0_36, %c0_37, %c0_38], %61 {strides = array<i32>} : memref<1x1x1xf32, #tpu.memory_space<vmem>>, vector<1x1x1xf32>,
    } else {
    }
    return
  }
  func.func @transform_0(%arg0: i32, %arg1: i32, %arg2: i32) -> (i32, i32) {
    %c1_i32 = arith.constant 1 : i32
    %0 = arith.muli %arg0, %c1_i32 : i32
    %1 = arith.addi %0, %arg1 : i32
    %c0_i32 = arith.constant 0 : i32
    %2 = arith.minsi %1, %c0_i32 : i32
    %c0_i32_0 = arith.constant 0 : i32
    return %2, %arg2 : i32, i32
  }
  func.func @transform_1(%arg0: i32, %arg1: i32, %arg2: i32) -> (i32, i32) {
    %c1_i32 = arith.constant 1 : i32
    %0 = arith.muli %arg0, %c1_i32 : i32
    %1 = arith.addi %0, %arg1 : i32
    %c0_i32 = arith.constant 0 : i32
    %2 = arith.minsi %1, %c0_i32 : i32
    %c0_i32_0 = arith.constant 0 : i32
    %c0_i32_1 = arith.constant 0 : i32
    return %2, %c0_i32_0 : i32, i32
  }
  func.func @transform_2(%arg0: i32, %arg1: i32, %arg2: i32) -> (i32, i32, i32) {
    %c0_i32 = arith.constant 0 : i32
    %c0_i32_0 = arith.constant 0 : i32
    %c0_i32_1 = arith.constant 0 : i32
    return %arg0, %c0_i32, %c0_i32_0 : i32, i32, i32
  }
}

</mosaic_0001>

<bundles_post_ra>
// kernel: tpu_custom_call.1
= control target key start
LH: loop header
LB: loop body
LE: loop exit
PB: predicated region body
PF: predicated region fallthrough
CT: control target
= control target key end

     0   :  { %vm89_vm0 = vcmask 130048   ;;  %s271_s0 = inlined_call_operand.vmem [shape: f32[8,16], index: 0, kind: input, shape index: {}]   ;;  %s272_s1 = inlined_call_operand.vmem [shape: s32[8,1], index: 1, kind: input, shape index: {}]   ;;  %s273_s2 = inlined_call_operand.hbm [shape: f32[1,1,1], index: 2, kind: output, shape index: {}]  }
   0x1   :  { %v81_v0 = vld [vmem:[%s271_s0] sm:$0xff] }
   0x2   :  { %7 = vsyncpa [#allocation6], 0  ;;  %v90_v1 = vsel %vm89_vm0, %v81_v0, -inf  ;;  %vm77_vm1 = vcmask 7168   ;;  %v222_v2 = vmov -inf   ;;  %v223_v3 = vmov 0  }
   0x3   :  { %91 = vmax.xlane.f32.xlu0 %v90_v1  ;;  %78 = vst.msk [vmem:[#allocation2] sm:$0xff] %vm77_vm1, %v222_v2  ;;  %189 = vset.pattern.permute.xlu1 %v223_v3  ;;  %v82_v4 = vld [vmem:[%s272_s1] sm:$0xff]  ;;  %v224_v5 = vmov 0.0   ;;  %v84_v13 = vlaneseq  ;;  %vm72_vm3 = vcmask 0   ;;  %s225_s0 = smov [#allocation5]  }
   0x4   :  { %188 = vset.pattern.permute.xlu0 %v223_v3  ;;  %115 = vperm.xlu1 %189, %v82_v4   ;;  %79 = vst.msk [vmem:[#allocation3] sm:$0xff] %vm77_vm1, %v224_v5  ;;  %80 = vst.msk [vmem:[#allocation4] sm:$0xff] %vm77_vm1, %v224_v5  ;;  %s162_s1 = sshll.u32 %s225_s0, 4  ;;  %s163_s1 = int_to_ptr.vmem [resolvable:$true] %s162_s1 }
   0x5   :  { %v85_v14 = vand.u32 127, %v84_v13  ;;  %73 = vst.msk [vmem:[#allocation5] sm:$0x1] %vm72_vm3, %v224_v5  ;;  %s198_s14 = scalar_lea.vmem %s163_s1, 16  ;;  %s202_s15 = scalar_lea.vmem %s163_s1, 32 }
   0x6   :  { %p199_p0 = scmp.ne.s32.totalorder %s163_s1, %s198_s14  ;;  %p203_p1 = scmp.lt.s32.totalorder %s163_s1, %s163_s1 }
   0x7   :  { %p204_p2 = scmp.lt.s32.totalorder %s202_s15, %s198_s14 }
   0x9   :  { %p205_p3 = por %p204_p2, %p203_p1 }
   0xa   :  { %v88_v6 = vld [vmem:[#allocation2] sm:$0xff] }
   0xb   :  { %v105_v22 = vld [vmem:[#allocation3] sm:$0xff]  ;;  %v118_v26 = vld [vmem:[#allocation4] sm:$0xff]  ;;  %p206_p4 = pnand %p205_p3, %p199_p0 }
   0xc   :  { %v141_v50 = vld [vmem:[#allocation5] sm:$0x1] }
  0x83   :  { %v116_v15 = vpop.permute.xlu1 %115 }
  0x84   :  { %vm117_vm2 = vcmp.eq.s32.totalorder %v85_v14, %v116_v15 }
  0x85   :  { %v119_v17 = vsel %vm117_vm2, %v81_v0, 0.0 }
  0x86   :  { %v120_v19 = vsel %vm89_vm0, %v119_v17, 0.0 }
  0x90   :  { %v92_v7 = vpop.xlane.xlu0 %91 }
  0x91   :  { %v93_v8 = vmax.f32 %v88_v6, %v92_v7 }
  0x93   :  { %v106_v9 = vsub.f32 %v88_v6, %v93_v8  ;;  %113 = vst.msk [vmem:[#allocation2] sm:$0xff] %vm77_vm1, %v93_v8  ;;  %96 = vperm.xlu0 %188, %v93_v8  }
  0x95   :  { %v107_v20 = vmul.f32 1.442695, %v106_v9 }
  0x9a   :  { %v128_v32 = vld [vmem:[#allocation2] sm:$0xff] }
 0x112   :  { %v97_v10 = vpop.permute.xlu0 %96 }
 0x113   :  { %v99_v11 = vsub.f32 %v81_v0, %v97_v10 }
 0x115   :  { %v100_v12 = vmul.f32 1.442695, %v99_v11 }
 0x117   :  { %190 = vpow2.f32 %v100_v12 }
 0x118   :  { %192 = vpow2.f32 %v107_v20 }
 0x121   :  { %v191_v16 = vpop.eup %190 }
 0x122   :  { %v102_v18 = vsel %vm89_vm0, %v191_v16, 0.0  ;;  %v193_v21 = vpop.eup %192 }
 0x123   :  { %103 = vadd.xlane.f32.xlu1 %v102_v18  ;;  %v109_v23 = vmul.f32 %v193_v21, %v105_v22 }
 0x127   :  { %121 = vadd.xlane.f32.xlu1 %v120_v19 }
 0x1b0   :  { %v104_v24 = vpop.xlane.xlu1 %103 }
 0x1b1   :  { %v110_v25 = vadd.f32 %v109_v23, %v104_v24 }
 0x1b3   :  { %112 = vst.msk [vmem:[#allocation3] sm:$0xff] %vm77_vm1, %v110_v25 }
 0x1b4   :  { %v122_v27 = vpop.xlane.xlu1 %121 }
 0x1b5   :  { %v123_v28 = vadd.f32 %v122_v27, %v118_v26 }
 0x1b7   :  { %124 = vst.msk [vmem:[#allocation4] sm:$0xff] %vm77_vm1, %v123_v28 }
 0x1ba   :  { %v129_v29 = vld [vmem:[#allocation3] sm:$0xff] }
 0x1bb   :  { %194 = vlog2.f32 %v129_v29 }
 0x1be   :  { %v133_v33 = vld [vmem:[#allocation4] sm:$0xff] }
 0x1c5   :  { %v195_v30 = vpop.eup %194 }
 0x1c6   :  { %v131_v31 = vmul.f32 0.6931472, %v195_v30 }
 0x1c8   :  { %v132_v34 = vadd.f32 %v131_v31, %v128_v32 }
 0x1ca   :  { %v134_v35 = vsub.f32 %v133_v33, %v132_v34 }
 0x1cc   :  { %v135_v36 = vmul.f32 1.442695, %v134_v35 }
 0x1ce   :  { %196 = vpow2.f32 %v135_v36 }
 0x1d8   :  { %v197_v37 = vpop.eup %196 }
 0x1d9   :  { %v137_v38 = vsub.f32 1.0, %v197_v37 }
 0x1db   :  { %v138_v39 = vmul.f32 -1.0, %v137_v38 }
 0x1dd   :  { %v139_v40 = vmul.f32 %v138_v39, %v137_v38 }
 0x1df   :  { %v140_v41 = vmul.f32 %v139_v40, %v134_v35 }
 0x1e1   :  { %v142_v42 = vsel %vm77_vm1, %v140_v41, 0.0 }
 0x1e2   :  { %143 = vadd.xlane.f32.xlu1 %v142_v42 }
 0x26f   :  { %v144_v43 = vpop.xlane.xlu1 %143 }
 0x270   :  { %v145_v44 = vrot.slane %v144_v43, 4 }
 0x272   :  { %v146_v45 = vadd.f32 %v145_v44, %v144_v43 }
 0x274   :  { %v147_v46 = vrot.slane %v146_v45, 2 }
 0x276   :  { %v148_v47 = vadd.f32 %v147_v46, %v146_v45 }
 0x278   :  { %v149_v48 = vrot.slane %v148_v47, 1 }
 0x27a   :  { %v150_v49 = vadd.f32 %v149_v48, %v148_v47 }
 0x27c   :  { %182 = vpush %v150_v49 }
 0x2ad   :  { %s183_s13 = spop %182 }
 0x2ae   :  { %v152_v51 = vstv %s183_s13 }
 0x2af   :  { %v153_v52 = vadd.f32 %v152_v51, %v141_v50 }
 0x2b1   :  { %155 = vst.msk [vmem:[#allocation5] sm:$0x1] %vm72_vm3, %v153_v52 }
 0x2b2   :  { %209 = shalt.err (!%p206_p4)
}
 0x2b3   :  { %s210_s18 = scalar_lea.hbm %s273_s2, 16 }
 0x2b4   :  { %p211_p5 = scmp.ne.s32.totalorder %s273_s2, %s210_s18  ;;  %p214_p6 = scmp.lt.u32.totalorder %s210_s18, %s273_s2 }
 0x2b6   :  { %p216_p7 = pnand %p214_p6, %p211_p5 }
 0x2b8   :  { %219 = shalt.err (!%p216_p7)
}
 0x2b9   :  { %165 = dma.vmem_to_hbm [thread:$0]  %s163_s1, 16, %s273_s2, [#allocation6]  }
 0x2ba   :  { %220 = dma.done.wait [#allocation6], 16  }
 0x2bb   :  { %221 = vsyncadd [#allocation6], 4294967280 }
 0x2bc   :  { %169 = vsyncpa [#allocation6], 1 }

</bundles_post_ra>
